<compile_context>
chip_gen: v5e
topology: v5e:2x2
jax: 0.10.0
libtpu: 0.0.40
codegen_flags: <defaults>
</compile_context>

<pallas_src>
import jax
import jax.numpy as jnp
from jax.experimental import pallas as pl
from jax.experimental.pallas import tpu as pltpu


def _round_up(x, m):
    return (x + m - 1) // m * m


# ---------------------------------------------------------------------------
# Parameter packing: all bf16 matmul weights -> ONE row-stacked slab,
# all f32 bias/scale/shift row vectors -> ONE lane-concatenated row slab.
# ---------------------------------------------------------------------------
def _pack_weight_slab(named_mats):
    width = _round_up(max(int(m.shape[1]) for _, m in named_mats), 128)
    offs, blocks, r = {}, [], 0
    for name, m in named_mats:
        nr, nc = int(m.shape[0]), int(m.shape[1])
        nr_pad = _round_up(nr, 16)                 # bf16 sublane tile = 16 rows
        blk = jnp.zeros((nr_pad, width), jnp.float32).at[:nr, :nc].set(m)
        blocks.append(blk)
        offs[name] = (r, nr, nc)
        r += nr_pad
    return jnp.concatenate(blocks, axis=0).astype(jnp.bfloat16), offs


def _pack_row_slab(named_vecs):
    offs, segs, c = {}, [], 0
    for name, v in named_vecs:
        v = jnp.asarray(v, jnp.float32).reshape(-1)
        n = int(v.shape[0])
        n_pad = _round_up(n, 128)                  # 128-aligned segment starts
        segs.append(jnp.zeros((n_pad,), jnp.float32).at[:n].set(v))
        offs[name] = (c, n)
        c += n_pad
    return jnp.concatenate(segs)[None, :], offs


# ---------------------------------------------------------------------------
# Fused forward kernel (whole network per row-block)
# ---------------------------------------------------------------------------
def _make_fused_kernel(w_offs, b_offs, layer_feats, out_vpu):
    """Kernel refs: (x, a_hat_blockdiag, w_slab, b_slab, out).
    Activations are node-major (rows, C*T) in PyTorch's c*T+t flatten order."""

    def kernel(x_ref, a_ref, w_ref, b_ref, o_ref):
        def wmat(name):                                   # bf16 MXU operand
            r0, nr, nc = w_offs[name]
            return w_ref[r0:r0 + nr, 0:nc]

        def brow(name):                                   # (1, n) f32 row
            c0, n = b_offs[name]
            return b_ref[0:1, c0:c0 + n]

        def mxu(a, b):                                    # bf16 in, f32 accum
            return jnp.dot(a.astype(jnp.bfloat16), b,
                           preferred_element_type=jnp.float32)

        a_hat = a_ref[...]                                # (M, M) f32

        # input 1x1 conv (baked as block-diagonal (Cin*T, C0*T) matrix)
        x = mxu(x_ref[...], wmat("w_in")) + brow("b_in")  # (M, C0*T) f32

        n_layers = len(layer_feats)
        for li in range(n_layers):
            F = layer_feats[li]
            # residual 1x1 conv + BOTH dilated k=3 gate convs: ONE wide matmul
            s = mxu(x, wmat(f"w_tcn{li}")) + brow(f"b_tcn{li}")   # (M, 3F)
            res = s[:, 0:F]
            # gates stay f32 (v5e has no bf16 VALU/EUP)
            g = jnp.tanh(s[:, F:2 * F]) * jax.nn.sigmoid(s[:, 2 * F:3 * F])
            # eval BN1: scale folded into GCN weight rows -> only a shift here
            g = g + brow(f"sh1p{li}")
            # GCN: A_hat @ (g @ W') + shift'  (BN2 folded into W'/shift').
            # A_hat aggregation kept in f32 (no bf16 downcast on MXU->MXU path).
            h = jnp.dot(a_hat, mxu(g, wmat(f"gcn_w{li}")),
                        preferred_element_type=jnp.float32)
            x = h + brow(f"gcn_shift{li}") + res
            if li != n_layers - 1:
                x = jnp.maximum(x, 0.0)                   # ReLU (not on last)
            # Dropout(p) in eval mode == identity.

        z = jnp.maximum(mxu(x, wmat("out_w1")) + brow("out_b1"), 0.0)
        if out_vpu:
            # 1-column projection: VPU multiply + lane reduce (avoids a
            # maximally lane-sparse MXU matmul).
            o_ref[...] = (jnp.sum(z * brow("out_w2"), axis=-1, keepdims=True)
                          + brow("out_b2"))
        else:
            o_ref[...] = mxu(z, wmat("out_w2")) + brow("out_b2")

    return kernel


# ---------------------------------------------------------------------------
# Graph normalization (GCNConv: Ahat = D^-1/2 (A + I) D^-1/2, dense)
# NOTE: duplicate edges are deduplicated and pre-existing self-loops handled
# only via +I (fine for the simple-graph test used here).
# ---------------------------------------------------------------------------
def build_ahat(edge_index, n_nodes):
    src, dst = edge_index[0], edge_index[1]
    a = jnp.zeros((n_nodes, n_nodes), jnp.float32).at[dst, src].set(1.0)
    a = a + jnp.eye(n_nodes, dtype=jnp.float32)
    deg = a.sum(axis=1)
    dinv = jax.lax.rsqrt(deg)
    return dinv[:, None] * a * dinv[None, :]


# ---------------------------------------------------------------------------
# Forward wrapper: batches graphs along the row (M) dimension, real grid axis.
# ---------------------------------------------------------------------------
def make_dstgcn_forward(meta):
    w_offs = meta["w_offs"]
    b_offs = meta["b_offs"]
    layer_feats = meta["layer_feats"]
    out_ch = meta["out_channels"]
    out_vpu = meta["out_vpu"]
    kernel = _make_fused_kernel(w_offs, b_offs, layer_feats, out_vpu)

    def forward(X, edge_index, w_slab, b_slab):
        # X: (N, Cin, T) single graph  or  (B, N, Cin, T) batch sharing edge_index.
        single = (X.ndim == 3)
        if single:
            X = X[None]
        B, N, Cin, T = X.shape
        x_flat = X.reshape(B * N, Cin * T)         # PyTorch c*T+t flatten order
        a_hat = build_ahat(edge_index, N)          # (N, N) f32

        total = B * N
        block_rows = None
        # 256 rows/step fills MXU rows on v6e/v7x; 128 is the v5e granularity.
        for cand in (256, 128):
            if total % cand == 0 and cand % N == 0:
                block_rows = cand
                break
        if block_rows is None:
            block_rows = total
        G = block_rows // N
        # Block-diagonal Ahat: every block of G graphs aggregates independently.
        a_blk = jnp.kron(jnp.eye(G, dtype=jnp.float32), a_hat)

        out_shape = jax.ShapeDtypeStruct((total, out_ch), jnp.float32)

        if block_rows == total:
            # Single block: no grid -> no pipeline prologue/epilogue overhead,
            # no pointless double buffering. Whole (tiny) arrays live in VMEM.
            vm = pl.BlockSpec(memory_space=pltpu.MemorySpace.VMEM)
            out = pl.pallas_call(
                kernel,
                out_shape=out_shape,
                in_specs=[vm, vm, vm, vm],
                out_specs=vm,
            )(x_flat, a_blk, w_slab, b_slab)
        else:
            n_blk = total // block_rows
            const2 = lambda i: (0, 0)              # weights stay VMEM-resident
            out = pl.pallas_call(
                kernel,
                out_shape=out_shape,
                grid=(n_blk,),
                in_specs=[
                    pl.BlockSpec((block_rows, Cin * T), lambda i: (i, 0)),
                    pl.BlockSpec(a_blk.shape, const2),
                    pl.BlockSpec(w_slab.shape, const2),
                    pl.BlockSpec(b_slab.shape, const2),
                ],
                out_specs=pl.BlockSpec((block_rows, out_ch), lambda i: (i, 0)),
                compiler_params=pltpu.CompilerParams(
                    dimension_semantics=("parallel",)),   # v7x: shard across TCs
            )(x_flat, a_blk, w_slab, b_slab)

        out = out.reshape(B, N, out_ch)
        return out[0] if single else out

    return forward


# ---------------------------------------------------------------------------
# Deterministic parameter init: convs baked into banded block matrices,
# BatchNorms folded (BN1 scale into GCN rows, BN2 into GCN cols/bias),
# then everything packed into one bf16 weight slab + one f32 row slab.
# ---------------------------------------------------------------------------
def init_params(key, in_channels, dilation_channels, dilations, n_sequences,
                end_channels, out_channels):
    T = n_sequences
    keys = iter(jax.random.split(key, 256))
    rnd = lambda shape, s=0.1: s * jax.random.normal(next(keys), shape, jnp.float32)

    def bn_fold(c):
        eps = 1e-5
        gamma = 1.0 + rnd((c,), 0.05)
        beta = rnd((c,), 0.05)
        mean = rnd((c,), 0.02)
        var = 1.0 + jnp.abs(rnd((c,), 0.1))
        scale = gamma * jax.lax.rsqrt(var + eps)
        shift = beta - mean * scale
        return scale, shift

    eyeT = jnp.eye(T, dtype=jnp.float32)
    conv1x1_block = lambda w: jnp.kron(w, eyeT)   # (Cin,Cout) -> (Cin*T, Cout*T)

    def dilated_block(wa, wb, wc, d):             # taps at t-d, t, t+d ('same')
        return (jnp.kron(wa, jnp.eye(T, k=d, dtype=jnp.float32))
                + jnp.kron(wb, eyeT)
                + jnp.kron(wc, jnp.eye(T, k=-d, dtype=jnp.float32)))

    C0 = dilation_channels[0]
    wmats = [("w_in", conv1x1_block(rnd((in_channels, C0))))]
    bvecs = [("b_in", jnp.repeat(rnd((C0,)), T))]
    layer_feats = []

    n_layers = len(dilation_channels) - 1
    for i in range(n_layers):
        cin, cout = dilation_channels[i], dilation_channels[i + 1]
        d = dilations[i]
        F = cout * T                              # keep F a multiple of 128 for
        layer_feats.append(F)                     # free lane-aligned gate slices

        res_w, res_b = rnd((cin, cout)), rnd((cout,))
        w1 = [rnd((cin, cout)) for _ in range(3)]
        b1 = rnd((cout,))
        w2 = [rnd((cin, cout)) for _ in range(3)]
        b2 = rnd((cout,))
        bn1s, bn1h = bn_fold(cout)
        bn2s, bn2h = bn_fold(cout)
        gcn_w, gcn_b = rnd((F, F), 0.05), rnd((F,))

        # Residual 1x1 conv + both dilated gate convs as ONE (Cin*T, 3F) matrix.
        w_tcn = jnp.concatenate([conv1x1_block(res_w),
                                 dilated_block(*w1, d),
                                 dilated_block(*w2, d)], axis=1)
        b_tcn = jnp.concatenate([jnp.repeat(res_b, T), jnp.repeat(b1, T),
                                 jnp.repeat(b2, T)])

        # Fold eval BN1 scale into GCN weight ROWS and eval BN2 into COLUMNS/bias
        # (exact: affine maps before/after a linear map).
        sc1, sh1 = jnp.repeat(bn1s, T), jnp.repeat(bn1h, T)
        sc2, sh2 = jnp.repeat(bn2s, T), jnp.repeat(bn2h, T)
        gcn_wf = (sc1[:, None] * gcn_w) * sc2[None, :]
        gcn_shift = gcn_b * sc2 + sh2
        sh1p = sh1 / sc1                          # kernel does (g + sh1p) @ gcn_wf

        wmats += [(f"w_tcn{i}", w_tcn), (f"gcn_w{i}", gcn_wf)]
        bvecs += [(f"b_tcn{i}", b_tcn), (f"sh1p{i}", sh1p),
                  (f"gcn_shift{i}", gcn_shift)]

    F_last = dilation_channels[-1] * T
    # TODO(synk): OutputLayer source not provided; synthesized as
    # Conv1d(C->end, k=n_steps) -> ReLU -> Conv1d(end->out, k=1).
    wmats.append(("out_w1", rnd((F_last, end_channels), 0.05)))
    bvecs.append(("out_b1", rnd((end_channels,))))
    out_vpu = (out_channels == 1)
    if out_vpu:
        bvecs.append(("out_w2", rnd((end_channels,))))   # row for VPU reduce path
    else:
        wmats.append(("out_w2", rnd((end_channels, out_channels))))
    bvecs.append(("out_b2", rnd((out_channels,))))

    w_slab, w_offs = _pack_weight_slab(wmats)
    b_slab, b_offs = _pack_row_slab(bvecs)

    params = dict(w_slab=w_slab, b_slab=b_slab)
    meta = dict(w_offs=w_offs, b_offs=b_offs, layer_feats=tuple(layer_feats),
                out_channels=out_channels, out_vpu=out_vpu)
    return params, meta


# ---------------------------------------------------------------------------
if __name__ == "__main__":
    N, Cin, T = 16, 4, 8
    dilation_channels = [8, 16, 16]
    dilations = [1, 2]
    end_channels = 32
    out_channels = 1
    B = 64                       # batch of graphs -> 1024 rows, 256-row grid blocks

    key = jax.random.PRNGKey(0)
    kx, kb, kp = jax.random.split(key, 3)

    params, meta = init_params(kp, Cin, dilation_channels, dilations, T,
                               end_channels, out_channels)

    # symmetric ring graph (shared by every graph in the batch)
    src = jnp.arange(N, dtype=jnp.int32)
    dst = (src + 1) % N
    edge_index = jnp.stack(
        [jnp.concatenate([src, dst]), jnp.concatenate([dst, src])])

    forward = make_dstgcn_forward(meta)
    fwd = jax.jit(forward)

    # 1) single-graph call (original module semantics; grid-less VMEM path)
    X1 = jax.random.normal(kx, (N, Cin, T), jnp.float32)
    out1 = jax.block_until_ready(
        fwd(X1, edge_index, params["w_slab"], params["b_slab"]))
    assert out1.shape == (N, out_channels) and bool(jnp.all(jnp.isfinite(out1)))

    # 2) batched call: B graphs, grid over 256-row blocks, "parallel" axis
    XB = jax.random.normal(kb, (B, N, Cin, T), jnp.float32)
    XB = XB.at[0].set(X1)
    outB = jax.block_until_ready(
        fwd(XB, edge_index, params["w_slab"], params["b_slab"]))
    assert outB.shape == (B, N, out_channels)
    assert bool(jnp.all(jnp.isfinite(outB)))
    # batched graph 0 must match the single-graph result
    assert bool(jnp.allclose(outB[0], out1, atol=1e-2, rtol=1e-2))

    print("KERNEL_OK")
</pallas_src>

<mosaic_0001>
module attributes {stable_mosaic.version = 11 : i64} {
  func.func @kernel(%arg0: memref<16x32xf32, #tpu.memory_space<vmem>>, %arg1: memref<16x16xf32, #tpu.memory_space<vmem>>, %arg2: memref<608x384xbf16, #tpu.memory_space<vmem>>, %arg3: memref<1x1792xf32, #tpu.memory_space<vmem>>, %arg4: memref<16x1xf32, #tpu.memory_space<vmem>>) attributes {dimension_semantics = [], scalar_prefetch = 0 : i64, scratch_operands = 0 : i64, tpu.core_type = #tpu.core_type<tc>} {
    %c0 = arith.constant 0 : index
    %c0_0 = arith.constant 0 : index
    %0 = vector.load %arg1[%c0, %c0_0] : memref<16x16xf32, #tpu.memory_space<vmem>>, vector<16x16xf32>
    %c0_1 = arith.constant 0 : index
    %c0_2 = arith.constant 0 : index
    %1 = vector.load %arg0[%c0_1, %c0_2] : memref<16x32xf32, #tpu.memory_space<vmem>>, vector<16x32xf32>
    %c0_3 = arith.constant 0 : index
    %c0_4 = arith.constant 0 : index
    %2 = vector.load %arg2[%c0_3, %c0_4] : memref<608x384xbf16, #tpu.memory_space<vmem>>, vector<32x64xbf16>
    %3 = arith.truncf %1 : vector<16x32xf32> to vector<16x32xbf16>
    %cst = arith.constant dense<0.000000e+00> : vector<16x64xf32>
    %4 = tpu.matmul %3, %2, %cst {dimension_numbers = #tpu.dot_dimension_numbers<[1], [0], [0], [1], [0, 0, 1, 1], [], []>} : vector<16x32xbf16>, vector<32x64xbf16>, vector<16x64xf32> -> vector<16x64xf32>
    %c0_5 = arith.constant 0 : index
    %c0_6 = arith.constant 0 : index
    %5 = vector.load %arg3[%c0_5, %c0_6] : memref<1x1792xf32, #tpu.memory_space<vmem>>, vector<1x64xf32>
    %6 = vector.broadcast %5 : vector<1x64xf32> to vector<16x64xf32>
    %7 = arith.addf %4, %6 : vector<16x64xf32>
    %c32 = arith.constant 32 : index
    %c0_7 = arith.constant 0 : index
    %8 = vector.load %arg2[%c32, %c0_7] : memref<608x384xbf16, #tpu.memory_space<vmem>>, vector<64x384xbf16>
    %9 = arith.truncf %7 : vector<16x64xf32> to vector<16x64xbf16>
    %cst_8 = arith.constant dense<0.000000e+00> : vector<16x384xf32>
    %10 = tpu.matmul %9, %8, %cst_8 {dimension_numbers = #tpu.dot_dimension_numbers<[1], [0], [0], [1], [0, 0, 1, 1], [], []>} : vector<16x64xbf16>, vector<64x384xbf16>, vector<16x384xf32> -> vector<16x384xf32>
    %c0_9 = arith.constant 0 : index
    %c128 = arith.constant 128 : index
    %11 = vector.load %arg3[%c0_9, %c128] : memref<1x1792xf32, #tpu.memory_space<vmem>>, vector<1x384xf32>
    %12 = vector.broadcast %11 : vector<1x384xf32> to vector<16x384xf32>
    %13 = arith.addf %10, %12 : vector<16x384xf32>
    %14 = vector.extract_strided_slice %13 {offsets = [0, 0], sizes = [16, 128], strides = [1, 1]} : vector<16x384xf32> to vector<16x128xf32>
    %15 = vector.extract_strided_slice %13 {offsets = [0, 128], sizes = [16, 128], strides = [1, 1]} : vector<16x384xf32> to vector<16x128xf32>
    %16 = math.tanh %15 : vector<16x128xf32>
    %17 = vector.extract_strided_slice %13 {offsets = [0, 256], sizes = [16, 128], strides = [1, 1]} : vector<16x384xf32> to vector<16x128xf32>
    %18 = arith.negf %17 : vector<16x128xf32>
    %19 = math.exp %18 : vector<16x128xf32>
    %cst_10 = arith.constant 1.000000e+00 : f32
    %20 = vector.broadcast %cst_10 : f32 to vector<16x128xf32>
    %21 = arith.addf %20, %19 : vector<16x128xf32>
    %22 = arith.divf %20, %21 : vector<16x128xf32>
    %23 = arith.mulf %16, %22 : vector<16x128xf32>
    %c0_11 = arith.constant 0 : index
    %c512 = arith.constant 512 : index
    %24 = vector.load %arg3[%c0_11, %c512] : memref<1x1792xf32, #tpu.memory_space<vmem>>, vector<1x128xf32>
    %25 = vector.broadcast %24 : vector<1x128xf32> to vector<16x128xf32>
    %26 = arith.addf %23, %25 : vector<16x128xf32>
    %c96 = arith.constant 96 : index
    %c0_12 = arith.constant 0 : index
    %27 = vector.load %arg2[%c96, %c0_12] : memref<608x384xbf16, #tpu.memory_space<vmem>>, vector<128x128xbf16>
    %28 = arith.truncf %26 : vector<16x128xf32> to vector<16x128xbf16>
    %cst_13 = arith.constant dense<0.000000e+00> : vector<16x128xf32>
    %29 = tpu.matmul %28, %27, %cst_13 {dimension_numbers = #tpu.dot_dimension_numbers<[1], [0], [0], [1], [0, 0, 1, 1], [], []>} : vector<16x128xbf16>, vector<128x128xbf16>, vector<16x128xf32> -> vector<16x128xf32>
    %cst_14 = arith.constant dense<0.000000e+00> : vector<16x128xf32>
    %30 = tpu.matmul %0, %29, %cst_14 {dimension_numbers = #tpu.dot_dimension_numbers<[1], [0], [0], [1], [0, 0, 1, 1], [], []>} : vector<16x16xf32>, vector<16x128xf32>, vector<16x128xf32> -> vector<16x128xf32>
    %c0_15 = arith.constant 0 : index
    %c640 = arith.constant 640 : index
    %31 = vector.load %arg3[%c0_15, %c640] : memref<1x1792xf32, #tpu.memory_space<vmem>>, vector<1x128xf32>
    %32 = vector.broadcast %31 : vector<1x128xf32> to vector<16x128xf32>
    %33 = arith.addf %30, %32 : vector<16x128xf32>
    %34 = arith.addf %33, %14 : vector<16x128xf32>
    %cst_16 = arith.constant 0.000000e+00 : f32
    %35 = vector.broadcast %cst_16 : f32 to vector<16x128xf32>
    %36 = arith.maximumf %34, %35 : vector<16x128xf32>
    %c224 = arith.constant 224 : index
    %c0_17 = arith.constant 0 : index
    %37 = vector.load %arg2[%c224, %c0_17] : memref<608x384xbf16, #tpu.memory_space<vmem>>, vector<128x384xbf16>
    %38 = arith.truncf %36 : vector<16x128xf32> to vector<16x128xbf16>
    %cst_18 = arith.constant dense<0.000000e+00> : vector<16x384xf32>
    %39 = tpu.matmul %38, %37, %cst_18 {dimension_numbers = #tpu.dot_dimension_numbers<[1], [0], [0], [1], [0, 0, 1, 1], [], []>} : vector<16x128xbf16>, vector<128x384xbf16>, vector<16x384xf32> -> vector<16x384xf32>
    %c0_19 = arith.constant 0 : index
    %c768 = arith.constant 768 : index
    %40 = vector.load %arg3[%c0_19, %c768] : memref<1x1792xf32, #tpu.memory_space<vmem>>, vector<1x384xf32>
    %41 = vector.broadcast %40 : vector<1x384xf32> to vector<16x384xf32>
    %42 = arith.addf %39, %41 : vector<16x384xf32>
    %43 = vector.extract_strided_slice %42 {offsets = [0, 0], sizes = [16, 128], strides = [1, 1]} : vector<16x384xf32> to vector<16x128xf32>
    %44 = vector.extract_strided_slice %42 {offsets = [0, 128], sizes = [16, 128], strides = [1, 1]} : vector<16x384xf32> to vector<16x128xf32>
    %45 = math.tanh %44 : vector<16x128xf32>
    %46 = vector.extract_strided_slice %42 {offsets = [0, 256], sizes = [16, 128], strides = [1, 1]} : vector<16x384xf32> to vector<16x128xf32>
    %47 = arith.negf %46 : vector<16x128xf32>
    %48 = math.exp %47 : vector<16x128xf32>
    %cst_20 = arith.constant 1.000000e+00 : f32
    %49 = vector.broadcast %cst_20 : f32 to vector<16x128xf32>
    %50 = arith.addf %49, %48 : vector<16x128xf32>
    %51 = arith.divf %49, %50 : vector<16x128xf32>
    %52 = arith.mulf %45, %51 : vector<16x128xf32>
    %c0_21 = arith.constant 0 : index
    %c1152 = arith.constant 1152 : index
    %53 = vector.load %arg3[%c0_21, %c1152] : memref<1x1792xf32, #tpu.memory_space<vmem>>, vector<1x128xf32>
    %54 = vector.broadcast %53 : vector<1x128xf32> to vector<16x128xf32>
    %55 = arith.addf %52, %54 : vector<16x128xf32>
    %c352 = arith.constant 352 : index
    %c0_22 = arith.constant 0 : index
    %56 = vector.load %arg2[%c352, %c0_22] : memref<608x384xbf16, #tpu.memory_space<vmem>>, vector<128x128xbf16>
    %57 = arith.truncf %55 : vector<16x128xf32> to vector<16x128xbf16>
    %cst_23 = arith.constant dense<0.000000e+00> : vector<16x128xf32>
    %58 = tpu.matmul %57, %56, %cst_23 {dimension_numbers = #tpu.dot_dimension_numbers<[1], [0], [0], [1], [0, 0, 1, 1], [], []>} : vector<16x128xbf16>, vector<128x128xbf16>, vector<16x128xf32> -> vector<16x128xf32>
    %cst_24 = arith.constant dense<0.000000e+00> : vector<16x128xf32>
    %59 = tpu.matmul %0, %58, %cst_24 {dimension_numbers = #tpu.dot_dimension_numbers<[1], [0], [0], [1], [0, 0, 1, 1], [], []>} : vector<16x16xf32>, vector<16x128xf32>, vector<16x128xf32> -> vector<16x128xf32>
    %c0_25 = arith.constant 0 : index
    %c1280 = arith.constant 1280 : index
    %60 = vector.load %arg3[%c0_25, %c1280] : memref<1x1792xf32, #tpu.memory_space<vmem>>, vector<1x128xf32>
    %61 = vector.broadcast %60 : vector<1x128xf32> to vector<16x128xf32>
    %62 = arith.addf %59, %61 : vector<16x128xf32>
    %63 = arith.addf %62, %43 : vector<16x128xf32>
    %c480 = arith.constant 480 : index
    %c0_26 = arith.constant 0 : index
    %64 = vector.load %arg2[%c480, %c0_26] : memref<608x384xbf16, #tpu.memory_space<vmem>>, vector<128x32xbf16>
    %65 = arith.truncf %63 : vector<16x128xf32> to vector<16x128xbf16>
    %cst_27 = arith.constant dense<0.000000e+00> : vector<16x32xf32>
    %66 = tpu.matmul %65, %64, %cst_27 {dimension_numbers = #tpu.dot_dimension_numbers<[1], [0], [0], [1], [0, 0, 1, 1], [], []>} : vector<16x128xbf16>, vector<128x32xbf16>, vector<16x32xf32> -> vector<16x32xf32>
    %c0_28 = arith.constant 0 : index
    %c1408 = arith.constant 1408 : index
    %67 = vector.load %arg3[%c0_28, %c1408] : memref<1x1792xf32, #tpu.memory_space<vmem>>, vector<1x32xf32>
    %68 = vector.broadcast %67 : vector<1x32xf32> to vector<16x32xf32>
    %69 = arith.addf %66, %68 : vector<16x32xf32>
    %cst_29 = arith.constant 0.000000e+00 : f32
    %70 = vector.broadcast %cst_29 : f32 to vector<16x32xf32>
    %71 = arith.maximumf %69, %70 : vector<16x32xf32>
    %c0_30 = arith.constant 0 : index
    %c1536 = arith.constant 1536 : index
    %72 = vector.load %arg3[%c0_30, %c1536] : memref<1x1792xf32, #tpu.memory_space<vmem>>, vector<1x32xf32>
    %73 = vector.broadcast %72 : vector<1x32xf32> to vector<16x32xf32>
    %74 = arith.mulf %71, %73 : vector<16x32xf32>
    %cst_31 = arith.constant dense<0.000000e+00> : vector<16xf32>
    %75 = vector.multi_reduction <add>, %74, %cst_31 [1] : vector<16x32xf32> to vector<16xf32>
    %76 = vector.shape_cast %75 : vector<16xf32> to vector<16x1xf32>
    %c0_32 = arith.constant 0 : index
    %c1664 = arith.constant 1664 : index
    %77 = vector.load %arg3[%c0_32, %c1664] : memref<1x1792xf32, #tpu.memory_space<vmem>>, vector<1x1xf32>
    %78 = vector.broadcast %77 : vector<1x1xf32> to vector<16x1xf32>
    %79 = arith.addf %76, %78 : vector<16x1xf32>
    %c0_33 = arith.constant 0 : index
    %c0_34 = arith.constant 0 : index
    %80 = vector.load %arg4[%c0_33, %c0_34] : memref<16x1xf32, #tpu.memory_space<vmem>>, vector<16x1xf32>
    tpu.vector_store %arg4[%c0_33, %c0_34], %79 {strides = array<i32>} : memref<16x1xf32, #tpu.memory_space<vmem>>, vector<16x1xf32>,
    return
  }
}

</mosaic_0001>

<bundles_post_ra>
// kernel: forward.1
= control target key start
LH: loop header
LB: loop body
LE: loop exit
PB: predicated region body
PF: predicated region fallthrough
CT: control target
= control target key end

     0   :  { %vm43_vm0 = vcmask 261120   ;;  %vm150_vm1 = vcmask 523264   ;;  %vm327_vm10 = vcmask 130048   ;;  %s1662_s2 = inlined_call_operand.vmem [shape: bf16[608,384], index: 2, kind: input, shape index: {}]   ;;  %s1663_s0 = inlined_call_operand.vmem [shape: f32[16,32], index: 0, kind: input, shape index: {}]   ;;  %s1664_s3 = inlined_call_operand.vmem [shape: f32[1,1792], index: 3, kind: input, shape index: {}]   ;;  %s1665_s1 = inlined_call_operand.vmem [shape: f32[16,16], index: 1, kind: input, shape index: {}]   ;;  %s1666_s4 = inlined_call_operand.vmem [shape: f32[16,1], index: 4, kind: output, shape index: {}]  }
   0x1   :  { %v844_v0 = vld [vmem:[%s1662_s2 + $0x18] sm:$0xf]  ;;  %v1099_v1 = vld [vmem:[%s1662_s2 + $0x20] sm:$0xf0]  ;;  %v840_v2 = vld [vmem:[%s1662_s2] sm:$0xf] }
   0x2   :  { %v845_v3 = vor.u32 %v1099_v1, %v844_v0  ;;  %v1098_v4 = vld [vmem:[%s1662_s2 + $0x8] sm:$0xf0]  ;;  %v20_v5 = vld [vmem:[%s1663_s0] sm:$0xff]  ;;  %v885_v7 = vld [vmem:[%s1662_s2 + $0x78] sm:$0xf] }
   0x3   :  { %v21_v6 = vld [vmem:[%s1663_s0 + $0x8] sm:$0xff]  ;;  %v1110_v8 = vld [vmem:[%s1662_s2 + $0x80] sm:$0xf0]  ;;  %v1109_v9 = vld [vmem:[%s1662_s2 + $0x7c] sm:$0xf]  ;;  %v841_v10 = vor.u32 %v1098_v4, %v840_v2 }
   0x4   :  { %53 = vmatpush.bf16.msra.mxu0 %v845_v3  ;;  %v886_v11 = vor.u32 %v1110_v8, %v885_v7  ;;  %v887_v12 = vld [vmem:[%s1662_s2 + $0x84] sm:$0xf0]  ;;  %v893_v13 = vld [vmem:[%s1662_s2 + $0x80] sm:$0xf]  ;;  %v1111_v14 = vld [vmem:[%s1662_s2 + $0x88] sm:$0xf0]  ;;  %v26_v17 = vpack.c.bf16 %v21_v6, %v20_v5 }
   0x5   :  { %v890_v15 = vor.u32 %v1109_v9, %v887_v12  ;;  %v894_v16 = vor.u32 %v1111_v14, %v893_v13  ;;  %v873_v18 = vld [vmem:[%s1662_s2 + $0x60] sm:$0xf]  ;;  %v1107_v19 = vld [vmem:[%s1662_s2 + $0x68] sm:$0xf0]  ;;  %v1106_v20 = vld [vmem:[%s1662_s2 + $0x64] sm:$0xf] }
   0x6   :  { %158 = vmatpush.bf16.msra.mxu1 %v886_v11  ;;  %v874_v21 = vor.u32 %v1107_v19, %v873_v18  ;;  %v875_v22 = vld [vmem:[%s1662_s2 + $0x6c] sm:$0xf0]  ;;  %v881_v23 = vld [vmem:[%s1662_s2 + $0x68] sm:$0xf]  ;;  %v1108_v24 = vld [vmem:[%s1662_s2 + $0x70] sm:$0xf0] }
   0x7   :  { %172 = vmatpush.bf16.msra.mxu2 %v890_v15  ;;  %186 = vmatpush.bf16.msra.mxu3 %v894_v16  ;;  %v878_v25 = vor.u32 %v1106_v20, %v875_v22  ;;  %v882_v26 = vor.u32 %v1108_v24, %v881_v23  ;;  %v861_v27 = vld [vmem:[%s1662_s2 + $0x48] sm:$0xf]  ;;  %v1104_v28 = vld [vmem:[%s1662_s2 + $0x50] sm:$0xf0]  ;;  %v1103_v29 = vld [vmem:[%s1662_s2 + $0x4c] sm:$0xf] }
   0x8   :  { %54 = vmatpush.bf16.msra.mxu0 %v841_v10  ;;  %v862_v30 = vor.u32 %v1104_v28, %v861_v27  ;;  %v863_v31 = vld [vmem:[%s1662_s2 + $0x54] sm:$0xf0]  ;;  %v869_v32 = vld [vmem:[%s1662_s2 + $0x50] sm:$0xf]  ;;  %v1105_v33 = vld [vmem:[%s1662_s2 + $0x58] sm:$0xf0] }
   0x9   :  { %v866_v34 = vor.u32 %v1103_v29, %v863_v31  ;;  %v870_v35 = vor.u32 %v1105_v33, %v869_v32  ;;  %v849_v36 = vld [vmem:[%s1662_s2 + $0x30] sm:$0xf]  ;;  %v1101_v37 = vld [vmem:[%s1662_s2 + $0x38] sm:$0xf0]  ;;  %v1100_v38 = vld [vmem:[%s1662_s2 + $0x34] sm:$0xf] }
   0xa   :  { %159 = vmatpush.bf16.msra.mxu1 %v874_v21  ;;  %v850_v39 = vor.u32 %v1101_v37, %v849_v36  ;;  %v851_v40 = vld [vmem:[%s1662_s2 + $0x3c] sm:$0xf0]  ;;  %v857_v41 = vld [vmem:[%s1662_s2 + $0x38] sm:$0xf]  ;;  %v1102_v42 = vld [vmem:[%s1662_s2 + $0x40] sm:$0xf0] }
   0xb   :  { %846 = vmatmul.msk.bf16.vlgmr.msra.gmra.mxu0 %vm43_vm0, %v26_v17  ;;  %173 = vmatpush.bf16.msra.mxu2 %v878_v25  ;;  %v854_v43 = vor.u32 %v1100_v38, %v851_v40  ;;  %v858_v44 = vor.u32 %v1102_v42, %v857_v41  ;;  %v1160_v46 = vld [vmem:[%s1664_s3] ss:$0 sm:$0xff]  ;;  %v930_v51 = vld [vmem:[%s1662_s2 + $0x138] sm:$0xf]  ;;  %v1119_v52 = vld [vmem:[%s1662_s2 + $0x140] sm:$0xf0] }
   0xc   :  { %187 = vmatpush.bf16.msra.mxu3 %v882_v26  ;;  %v931_v53 = vor.u32 %v1119_v52, %v930_v51  ;;  %v926_v54 = vld [vmem:[%s1662_s2 + $0x120] sm:$0xf]  ;;  %v1118_v55 = vld [vmem:[%s1662_s2 + $0x128] sm:$0xf0]  ;;  %v922_v57 = vld [vmem:[%s1662_s2 + $0x108] sm:$0xf] }
   0xd   :  { %v927_v56 = vor.u32 %v1118_v55, %v926_v54  ;;  %v1117_v58 = vld [vmem:[%s1662_s2 + $0x110] sm:$0xf0]  ;;  %v918_v60 = vld [vmem:[%s1662_s2 + $0xf0] sm:$0xf]  ;;  %v1116_v61 = vld [vmem:[%s1662_s2 + $0xf8] sm:$0xf0] }
   0xe   :  { %160 = vmatpush.bf16.msra.mxu1 %v862_v30  ;;  %309 = vmatpush.bf16.msrb.mxu0 %v931_v53  ;;  %v923_v59 = vor.u32 %v1117_v58, %v922_v57  ;;  %v919_v62 = vor.u32 %v1116_v61, %v918_v60  ;;  %v914_v63 = vld [vmem:[%s1662_s2 + $0xd8] sm:$0xf]  ;;  %v1115_v0 = vld [vmem:[%s1662_s2 + $0xe0] sm:$0xf0]  ;;  %v1344_v1 = vld [vmem:[%s1664_s3 + $0x1] sm:$0x7] }
   0xf   :  { %174 = vmatpush.bf16.msra.mxu2 %v866_v34  ;;  %v915_v2 = vor.u32 %v1115_v0, %v914_v63  ;;  %v82_v3 = vperm.slane %v1344_v1, 2  ;;  %v910_v4 = vld [vmem:[%s1662_s2 + $0xc0] sm:$0xf]  ;;  %v1114_v5 = vld [vmem:[%s1662_s2 + $0xc8] sm:$0xf0]  ;;  %v81_v26 = vperm.slane %v1344_v1, 1 }
  0x10   :  { %188 = vmatpush.bf16.msra.mxu3 %v870_v35  ;;  %v906_v6 = vld [vmem:[%s1662_s2 + $0xa8] sm:$0xf]  ;;  %v911_v8 = vor.u32 %v1114_v5, %v910_v4  ;;  %v1113_v9 = vld [vmem:[%s1662_s2 + $0xb0] sm:$0xf0]  ;;  %v902_v13 = vld [vmem:[%s1662_s2 + $0x90] sm:$0xf] }
  0x11   :  { %v907_v11 = vor.u32 %v1113_v9, %v906_v6  ;;  %v1112_v14 = vld [vmem:[%s1662_s2 + $0x98] sm:$0xf0]  ;;  %v1142_v57 = vld [vmem:[%s1662_s2 + $0x200] sm:$0xf0]  ;;  %v1022_v60 = vld [vmem:[%s1662_s2 + $0x204] sm:$0xf0] }
  0x12   :  { %161 = vmatpush.bf16.msra.mxu1 %v850_v39  ;;  %310 = vmatpush.bf16.msrb.mxu0 %v927_v56  ;;  %v903_v15 = vor.u32 %v1112_v14, %v902_v13  ;;  %v1020_v56 = vld [vmem:[%s1662_s2 + $0x1f8] sm:$0xf]  ;;  %v1141_v58 = vld [vmem:[%s1662_s2 + $0x1fc] sm:$0xf]  ;;  %v1139_v63 = vld [vmem:[%s1662_s2 + $0x1e8] sm:$0xf0] }
  0x13   :  { %175 = vmatpush.bf16.msra.mxu2 %v854_v43  ;;  %v1025_v61 = vor.u32 %v1141_v58, %v1022_v60  ;;  %v1138_v0 = vld [vmem:[%s1662_s2 + $0x1e4] sm:$0xf]  ;;  %v996_v5 = vld [vmem:[%s1662_s2 + $0x1c8] sm:$0xf]  ;;  %v1136_v6 = vld [vmem:[%s1662_s2 + $0x1d0] sm:$0xf0] }
  0x14   :  { %189 = vmatpush.bf16.msra.mxu3 %v858_v44  ;;  %v997_v9 = vor.u32 %v1136_v6, %v996_v5  ;;  %v1132_v13 = vld [vmem:[%s1662_s2 + $0x1b4] sm:$0xf]  ;;  %v986_v14 = vld [vmem:[%s1662_s2 + $0x1bc] sm:$0xf0]  ;;  %v936_v60 = vld [vmem:[%s1662_s2 + $0x150] sm:$0xf] }
  0x16   :  { %311 = vmatpush.bf16.msrb.mxu0 %v923_v59  ;;  %v1021_v59 = vor.u32 %v1142_v57, %v1020_v56  ;;  %v956_v56 = vld [vmem:[%s1662_s2 + $0x170] sm:$0xf]  ;;  %v1125_v57 = vld [vmem:[%s1662_s2 + $0x178] sm:$0xf0] }
  0x18   :  { %530 = vmatpush.bf16.msrb.mxu2 %v1021_v59  ;;  %544 = vmatpush.bf16.msrb.mxu3 %v1025_v61  ;;  %v957_v59 = vor.u32 %v1125_v57, %v956_v56  ;;  %v1121_v61 = vld [vmem:[%s1662_s2 + $0x158] sm:$0xf0] }
  0x1a   :  { %312 = vmatpush.bf16.msrb.mxu0 %v919_v62  ;;  %v1008_v62 = vld [vmem:[%s1662_s2 + $0x1e0] sm:$0xf] }
  0x1e   :  { %313 = vmatpush.bf16.msrb.mxu0 %v915_v2  ;;  %v1009_v2 = vor.u32 %v1139_v63, %v1008_v62  ;;  %v1120_v62 = vld [vmem:[%s1662_s2 + $0x154] sm:$0xf]  ;;  %v937_v63 = vor.u32 %v1121_v61, %v936_v60 }
  0x20   :  { %531 = vmatpush.bf16.msrb.mxu2 %v1009_v2  ;;  %v944_v2 = vld [vmem:[%s1662_s2 + $0x158] sm:$0xf] }
  0x22   :  { %314 = vmatpush.bf16.msrb.mxu0 %v911_v8  ;;  %v998_v8 = vld [vmem:[%s1662_s2 + $0x1d4] sm:$0xf0] }
  0x24   :  { %532 = vmatpush.bf16.msrb.mxu2 %v997_v9  ;;  %v1162_v9 = vld [vmem:[%s1664_s3 + $0x5] ss:$0 sm:$0xff] }
  0x26   :  { %315 = vmatpush.bf16.msrb.mxu0 %v907_v11  ;;  %v984_v11 = vld [vmem:[%s1662_s2 + $0x1b0] sm:$0xf] }
  0x2a   :  { %316 = vmatpush.bf16.msrb.mxu0 %v903_v15 }
  0x88   :  { %v56_v45 = vpop.f32.mrf.mxu0 }
  0x89   :  { %v57_v48 = vadd.f32 %v1160_v46, %v56_v45 }
  0x90   :  { %v58_v47 = vpop.f32.mrf.mxu0 }
  0x91   :  { %v59_v49 = vadd.f32 %v1160_v46, %v58_v47 }
  0x93   :  { %v77_v50 = vpack.c.bf16 %v59_v49, %v57_v48  ;;  %v1161_v49 = vld [vmem:[%s1664_s3 + $0x4] ss:$0 sm:$0xff] }
  0x95   :  { %895 = vmatmul.msk.bf16.vlgmr.msra.gmra.mxu1 %vm150_vm1, %v77_v50  ;;  %896 = vmatmul.msk.bf16.vlgmr.msra.gmra.mxu2 %vm150_vm1, %v77_v50 }
  0x96   :  { %897 = vmatmul.msk.bf16.vlgmr.msra.gmra.mxu3 %vm150_vm1, %v77_v50 }
 0x112   :  { %v163_v6 = vpop.f32.mrf.mxu1 }
 0x118   :  { %v177_v21 = vpop.f32.mrf.mxu2 }
 0x119   :  { %v191_v7 = vpop.f32.mrf.mxu3  ;;  %v178_v30 = vadd.f32 %v177_v21, %v81_v26  ;;  %v1426_v21 = vld [vmem:[%s1665_s1] sm:$0xff] }
 0x11a   :  { %v192_v10 = vadd.f32 %v191_v7, %v82_v3  ;;  %v1135_v7 = vld [vmem:[%s1662_s2 + $0x1cc] sm:$0xf] }
 0x11c   :  { %v898_v12 = vmul.f32 -1.442695, %v192_v10  ;;  %v1001_v10 = vor.u32 %v1135_v7, %v998_v8  ;;  %v165_v7 = vpop.f32.mrf.mxu1 }
 0x11e   :  { %1168 = vpow2.f32 %v898_v12  ;;  %v1133_v12 = vld [vmem:[%s1662_s2 + $0x1b8] sm:$0xf0] }
 0x11f   :  { %v985_v15 = vor.u32 %v1133_v12, %v984_v11 }
 0x120   :  { %v179_v28 = vpop.f32.mrf.mxu2 }
 0x121   :  { %v193_v16 = vpop.f32.mrf.mxu3  ;;  %v180_v33 = vadd.f32 %v179_v28, %v81_v26  ;;  %533 = vmatpush.bf16.msrb.mxu2 %v985_v15  ;;  %v1004_v26 = vld [vmem:[%s1662_s2 + $0x1d0] sm:$0xf]  ;;  %v1445_v28 = vld [vmem:[%s1665_s1 + $0x8] sm:$0xff] }
 0x122   :  { %v194_v17 = vadd.f32 %v193_v16, %v82_v3  ;;  %v1010_v3 = vld [vmem:[%s1662_s2 + $0x1ec] sm:$0xf0] }
 0x123   :  { %v1013_v4 = vor.u32 %v1138_v0, %v1010_v3  ;;  %v938_v0 = vld [vmem:[%s1662_s2 + $0x15c] sm:$0xf0]  ;;  %v1122_v3 = vld [vmem:[%s1662_s2 + $0x160] sm:$0xf0] }
 0x124   :  { %v1169_v18 = vpop.eup %1168  ;;  %v899_v19 = vmul.f32 -1.442695, %v194_v17  ;;  %v989_v17 = vor.u32 %v1132_v13, %v986_v14  ;;  %v945_v5 = vor.u32 %v1122_v3, %v944_v2 }
 0x125   :  { %v204_v20 = vadd.f32 1.0, %v1169_v18  ;;  %545 = vmatpush.bf16.msrb.mxu3 %v1013_v4  ;;  %v1028_v18 = vld [vmem:[%s1662_s2 + $0x200] sm:$0xf]  ;;  %v941_v4 = vor.u32 %v1120_v62, %v938_v0 }
 0x126   :  { %1170 = vpow2.f32 %v899_v19  ;;  %v1143_v19 = vld [vmem:[%s1662_s2 + $0x208] sm:$0xf0] }
 0x127   :  { %1172 = vrcp.f32 %v204_v20  ;;  %v217_v34 = vand.u32 2147483648, %v204_v20  ;;  %vm211_vm3 = vweird.f32 %v204_v20  ;;  %v215_v36 = vand.u32 2147483647, %v204_v20 }
 0x129   :  { %v218_v39 = vor.u32 1.1754944e-38, %v217_v34  ;;  %vm216_vm5 = vcmp.eq.f32.partialorder %v215_v36, 8.507059e+37  ;;  %546 = vmatpush.bf16.msrb.mxu3 %v1001_v10  ;;  %v1130_v34 = vld [vmem:[%s1662_s2 + $0x1a0] sm:$0xf0]  ;;  %v80_v10 = vperm.slane %v1344_v1, 0 }
 0x12a   :  { %v1151_v1 = vld [vmem:[%s1662_s2 + $0x2c0] sm:$0xf0] }
 0x12b   :  { %v164_v12 = vadd.f32 %v163_v6, %v80_v10  ;;  %v166_v14 = vadd.f32 %v165_v7, %v80_v10 }
 0x12c   :  { %v1171_v22 = vpop.eup %1170 }
 0x12d   :  { %v1173_v23 = vpop.eup %1172  ;;  %v205_v24 = vadd.f32 1.0, %v1171_v22  ;;  %547 = vmatpush.bf16.msrb.mxu3 %v989_v17  ;;  %v1029_v22 = vor.u32 %v1143_v19, %v1028_v18 }
 0x12e   :  { %v207_v25 = vmul.f32 %v1173_v23, %v204_v20  ;;  %vm212_vm2 = vweird.f32 %v1173_v23 }
 0x12f   :  { %1174 = vrcp.f32 %v205_v24  ;;  %vm213_vm4 = vmor %vm211_vm3, %vm212_vm2  ;;  %v232_v40 = vand.u32 2147483648, %v205_v24  ;;  %v230_v42 = vand.u32 2147483647, %v205_v24  ;;  %vm226_vm7 = vweird.f32 %v205_v24 }
 0x130   :  { %v208_v27 = vsub.f32 1.0, %v207_v25  ;;  %1176 = vtanh.f32 %v178_v30  ;;  %v992_v30 = vld [vmem:[%s1662_s2 + $0x1b8] sm:$0xf] }
 0x131   :  { %1178 = vtanh.f32 %v180_v33  ;;  %v233_v46 = vor.u32 1.1754944e-38, %v232_v40  ;;  %vm231_vm9 = vcmp.eq.f32.partialorder %v230_v42, 8.507059e+37  ;;  %v972_v33 = vld [vmem:[%s1662_s2 + $0x198] sm:$0xf]  ;;  %v960_v42 = vld [vmem:[%s1662_s2 + $0x180] sm:$0xf] }
 0x132   :  { %v209_v29 = vmul.f32 %v1173_v23, %v208_v27  ;;  %v1137_v27 = vld [vmem:[%s1662_s2 + $0x1d8] sm:$0xf0]  ;;  %v973_v36 = vor.u32 %v1130_v34, %v972_v33  ;;  %v1558_v34 = vld [vmem:[%s1664_s3 + $0x6] sm:$0x7] }
 0x133   :  { %v397_v61 = vperm.slane %v1558_v34, 1 }
 0x134   :  { %v210_v31 = vadd.f32 %v1173_v23, %v209_v29  ;;  %v1005_v29 = vor.u32 %v1137_v27, %v1004_v26  ;;  %534 = vmatpush.bf16.msrb.mxu2 %v973_v36  ;;  %v1054_v27 = vld [vmem:[%s1662_s2 + $0x288] sm:$0xf]  ;;  %v1147_v36 = vld [vmem:[%s1662_s2 + $0x260] sm:$0xf0] }
 0x135   :  { %v1175_v32 = vpop.eup %1174 }
 0x136   :  { %v222_v35 = vmul.f32 %v1175_v32, %v205_v24  ;;  %v214_v38 = vsel %vm213_vm4, %v1173_v23, %v210_v31  ;;  %vm227_vm6 = vweird.f32 %v1175_v32  ;;  %v1177_v45 = vpop.eup %1176  ;;  %v1016_v23 = vld [vmem:[%s1662_s2 + $0x1e8] sm:$0xf]  ;;  %v1140_v24 = vld [vmem:[%s1662_s2 + $0x1f0] sm:$0xf0]  ;;  %v1134_v31 = vld [vmem:[%s1662_s2 + $0x1c0] sm:$0xf0] }
 0x137   :  { %v219_v43 = vsel %vm216_vm5, %v218_v39, %v214_v38  ;;  %vm228_vm8 = vmor %vm226_vm7, %vm227_vm6  ;;  %v1179_v50 = vpop.eup %1178  ;;  %v1017_v25 = vor.u32 %v1140_v24, %v1016_v23  ;;  %v980_v38 = vld [vmem:[%s1662_s2 + $0x1a0] sm:$0xf]  ;;  %v1131_v39 = vld [vmem:[%s1662_s2 + $0x1a8] sm:$0xf0]  ;;  %vm831_vm4 = vcmask 7168  }
 0x138   :  { %v223_v37 = vsub.f32 1.0, %v222_v35  ;;  %v236_v48 = vmul.f32 %v1177_v45, %v219_v43  ;;  %v1129_v35 = vld [vmem:[%s1662_s2 + $0x19c] sm:$0xf]  ;;  %v1127_v43 = vld [vmem:[%s1662_s2 + $0x188] sm:$0xf0] }
 0x139   :  { %v961_v45 = vor.u32 %v1127_v43, %v960_v42  ;;  %v1058_v24 = vld [vmem:[%s1662_s2 + $0x2a0] sm:$0xf] }
 0x13a   :  { %v224_v41 = vmul.f32 %v1175_v32, %v223_v37  ;;  %v242_v53 = vadd.f32 %v1161_v49, %v236_v48  ;;  %v974_v37 = vld [vmem:[%s1662_s2 + $0x1a4] sm:$0xf0]  ;;  %v1128_v48 = vld [vmem:[%s1662_s2 + $0x190] sm:$0xf0] }
 0x13b   :  { %v977_v40 = vor.u32 %v1129_v35, %v974_v37  ;;  %535 = vmatpush.bf16.msrb.mxu2 %v961_v45  ;;  %v1046_v35 = vld [vmem:[%s1662_s2 + $0x258] sm:$0xf]  ;;  %v1038_v45 = vld [vmem:[%s1662_s2 + $0x228] sm:$0xf] }
 0x13c   :  { %v225_v44 = vadd.f32 %v1175_v32, %v224_v41  ;;  %v981_v41 = vor.u32 %v1131_v39, %v980_v38  ;;  %v1047_v37 = vor.u32 %v1147_v36, %v1046_v35  ;;  %v398_v38 = vperm.slane %v1558_v34, 2  ;;  %v1042_v39 = vld [vmem:[%s1662_s2 + $0x240] sm:$0xf]  ;;  %v1088_v36 = vld [vmem:[%s1662_s2 + $0x348] sm:$0xf] }
 0x13d   :  { %548 = vmatpush.bf16.msrb.mxu3 %v977_v40  ;;  %v1146_v40 = vld [vmem:[%s1662_s2 + $0x248] sm:$0xf0] }
 0x13e   :  { %v229_v47 = vsel %vm228_vm8, %v1175_v32, %v225_v44  ;;  %v993_v32 = vor.u32 %v1134_v31, %v992_v30  ;;  %v1126_v44 = vld [vmem:[%s1662_s2 + $0x184] sm:$0xf]  ;;  %v1050_v31 = vld [vmem:[%s1662_s2 + $0x270] sm:$0xf]  ;;  %v1043_v42 = vor.u32 %v1146_v40, %v1042_v39  ;;  %v1156_v40 = vld [vmem:[%s1662_s2 + $0x338] sm:$0xf0] }
 0x13f   :  { %v234_v51 = vsel %vm231_vm9, %v233_v46, %v229_v47  ;;  %v962_v46 = vld [vmem:[%s1662_s2 + $0x18c] sm:$0xf0]  ;;  %v968_v47 = vld [vmem:[%s1662_s2 + $0x188] sm:$0xf] }
 0x140   :  { %v237_v52 = vmul.f32 %v1179_v50, %v234_v51  ;;  %v969_v50 = vor.u32 %v1128_v48, %v968_v47  ;;  %v948_v51 = vld [vmem:[%s1662_s2 + $0x168] sm:$0xf]  ;;  %v1034_v48 = vld [vmem:[%s1662_s2 + $0x210] sm:$0xf] }
 0x141   :  { %v1084_v39 = vld [vmem:[%s1662_s2 + $0x330] sm:$0xf] }
 0x142   :  { %v243_v54 = vadd.f32 %v1161_v49, %v237_v52  ;;  %v965_v49 = vor.u32 %v1126_v44, %v962_v46  ;;  %v1124_v52 = vld [vmem:[%s1662_s2 + $0x170] sm:$0xf0] }
 0x143   :  { %v1145_v46 = vld [vmem:[%s1662_s2 + $0x230] sm:$0xf0] }
 0x144   :  { %v260_v55 = vpack.c.bf16 %v243_v54, %v242_v53  ;;  %549 = vmatpush.bf16.msrb.mxu3 %v965_v49  ;;  %v1123_v53 = vld [vmem:[%s1662_s2 + $0x16c] sm:$0xf]  ;;  %v949_v54 = vor.u32 %v1124_v52, %v948_v51  ;;  %v1039_v47 = vor.u32 %v1145_v46, %v1038_v45  ;;  %v1144_v49 = vld [vmem:[%s1662_s2 + $0x218] sm:$0xf0]  ;;  %v1155_v45 = vld [vmem:[%s1662_s2 + $0x320] sm:$0xf0] }
 0x145   :  { %v1035_v51 = vor.u32 %v1144_v49, %v1034_v48  ;;  %v1153_v49 = vld [vmem:[%s1662_s2 + $0x2f0] sm:$0xf0] }
 0x146   :  { %317 = vmatmul.bf16.vlgmr.msrb.gmra.mxu0 %v260_v55  ;;  %v950_v55 = vld [vmem:[%s1662_s2 + $0x174] sm:$0xf0]  ;;  %536 = vmatpush.bf16.msrb.mxu2 %v949_v54 }
 0x147   :  { %v953_v58 = vor.u32 %v1123_v53, %v950_v55 }
 0x149   :  { %550 = vmatpush.bf16.msrb.mxu3 %v953_v58 }
 0x14a   :  { %537 = vmatpush.bf16.msrb.mxu2 %v937_v63 }
 0x14d   :  { %551 = vmatpush.bf16.msrb.mxu3 %v941_v4 }
 0x1c3   :  { %v318_v16 = vpop.f32.mrf.mxu0 }
 0x1cb   :  { %v320_v20 = vpop.f32.mrf.mxu0 }
 0x1cc   :  { %348 = vmatpush.msrb.mxu1 %v320_v20 }
 0x1ce   :  { %349 = vmatpush.msrb.mxu1 %v318_v16 }
 0x1cf   :  { %932 = vmatmul.msk.f32.vlgmr.msrb.gmra.mxu1 %vm327_vm10, %v1426_v21 }
 0x1d0   :  { %558 = vmatpush.bf16.msra.mxu1 %v1029_v22  ;;  %v1062_v22 = vld [vmem:[%s1662_s2 + $0x2b8] sm:$0xf] }
 0x1d1   :  { %v1063_v23 = vor.u32 %v1151_v1, %v1062_v22  ;;  %v1163_v22 = vld [vmem:[%s1664_s3 + $0x9] ss:$0 sm:$0xff] }
 0x1d3   :  { %685 = vmatpush.bf16.msra.mxu0 %v1063_v23 }
 0x1d4   :  { %559 = vmatpush.bf16.msra.mxu1 %v1017_v25  ;;  %v1150_v25 = vld [vmem:[%s1662_s2 + $0x2a8] sm:$0xf0] }
 0x1d5   :  { %v1059_v26 = vor.u32 %v1150_v25, %v1058_v24 }
 0x1d7   :  { %933 = vmatmul.msk.f32.gmra.mxu1 %vm327_vm10, %v1445_v28  ;;  %686 = vmatpush.bf16.msra.mxu0 %v1059_v26 }
 0x1d8   :  { %560 = vmatpush.bf16.msra.mxu1 %v1005_v29  ;;  %v1149_v29 = vld [vmem:[%s1662_s2 + $0x290] sm:$0xf0] }
 0x1d9   :  { %v1055_v30 = vor.u32 %v1149_v29, %v1054_v27  ;;  %v1096_v29 = vld [vmem:[%s1662_s2 + $0x378] sm:$0xf] }
 0x1db   :  { %687 = vmatpush.bf16.msra.mxu0 %v1055_v30  ;;  %v1159_v30 = vld [vmem:[%s1662_s2 + $0x380] sm:$0xf0] }
 0x1dc   :  { %561 = vmatpush.bf16.msra.mxu1 %v993_v32  ;;  %v1148_v32 = vld [vmem:[%s1662_s2 + $0x278] sm:$0xf0] }
 0x1dd   :  { %v1051_v33 = vor.u32 %v1148_v32, %v1050_v31  ;;  %v1092_v31 = vld [vmem:[%s1662_s2 + $0x360] sm:$0xf]  ;;  %v1097_v32 = vor.u32 %v1159_v30, %v1096_v29 }
 0x1df   :  { %688 = vmatpush.bf16.msra.mxu0 %v1051_v33  ;;  %v1158_v33 = vld [vmem:[%s1662_s2 + $0x368] sm:$0xf0]  ;;  %797 = vmatpush.bf16.msra.mxu3 %v1097_v32 }
 0x1e0   :  { %562 = vmatpush.bf16.msra.mxu1 %v981_v41  ;;  %v1093_v35 = vor.u32 %v1158_v33, %v1092_v31 }
 0x1e3   :  { %689 = vmatpush.bf16.msra.mxu0 %v1047_v37  ;;  %v1157_v37 = vld [vmem:[%s1662_s2 + $0x350] sm:$0xf0]  ;;  %798 = vmatpush.bf16.msra.mxu3 %v1093_v35 }
 0x1e4   :  { %563 = vmatpush.bf16.msra.mxu1 %v969_v50 }
 0x1e7   :  { %690 = vmatpush.bf16.msra.mxu0 %v1043_v42 }
 0x1e8   :  { %564 = vmatpush.bf16.msra.mxu1 %v957_v59 }
 0x1eb   :  { %691 = vmatpush.bf16.msra.mxu0 %v1039_v47  ;;  %v1076_v47 = vld [vmem:[%s1662_s2 + $0x300] sm:$0xf] }
 0x1ec   :  { %565 = vmatpush.bf16.msra.mxu1 %v945_v5 }
 0x1ef   :  { %692 = vmatpush.bf16.msra.mxu0 %v1035_v51  ;;  %v1068_v51 = vld [vmem:[%s1662_s2 + $0x2d0] sm:$0xf] }
 0x24c   :  { %v351_v8 = vpop.f32.mrf.mxu1 }
 0x24d   :  { %v352_v11 = vadd.f32 %v1162_v9, %v351_v8 }
 0x24f   :  { %v357_v15 = vadd.f32 %v352_v11, %v164_v12 }
 0x251   :  { %v359_v18 = vmax.f32 %v357_v15, 0.0 }
 0x254   :  { %v354_v13 = vpop.f32.mrf.mxu1 }
 0x255   :  { %v355_v16 = vadd.f32 %v1162_v9, %v354_v13 }
 0x257   :  { %v358_v17 = vadd.f32 %v355_v16, %v166_v14 }
 0x259   :  { %v360_v19 = vmax.f32 %v358_v17, 0.0 }
 0x25b   :  { %v393_v20 = vpack.c.bf16 %v360_v19, %v359_v18 }
 0x25d   :  { %538 = vmatmul.bf16.vlgmr.msrb.gmra.mxu2 %v393_v20  ;;  %552 = vmatmul.bf16.vlgmr.msrb.gmra.mxu3 %v393_v20 }
 0x25e   :  { %566 = vmatmul.bf16.vlgmr.msra.gmra.mxu1 %v393_v20 }
 0x2db   :  { %v567_v41 = vpop.f32.mrf.mxu1 }
 0x2dc   :  { %v568_v43 = vadd.f32 %v567_v41, %v398_v38  ;;  %v1085_v41 = vor.u32 %v1156_v40, %v1084_v39 }
 0x2de   :  { %v1030_v44 = vmul.f32 -1.442695, %v568_v43 }
 0x2e0   :  { %1180 = vpow2.f32 %v1030_v44  ;;  %v553_v56 = vpop.f32.mrf.mxu3  ;;  %v1080_v44 = vld [vmem:[%s1662_s2 + $0x318] sm:$0xf] }
 0x2e1   :  { %v554_v2 = vadd.f32 %v553_v56, %v397_v61  ;;  %v1081_v46 = vor.u32 %v1155_v45, %v1080_v44 }
 0x2e3   :  { %v569_v50 = vpop.f32.mrf.mxu1 }
 0x2e4   :  { %v570_v52 = vadd.f32 %v569_v50, %v398_v38  ;;  %v1089_v38 = vor.u32 %v1157_v37, %v1088_v36 }
 0x2e6   :  { %v1181_v53 = vpop.eup %1180  ;;  %v1031_v54 = vmul.f32 -1.442695, %v570_v52  ;;  %799 = vmatpush.bf16.msra.mxu3 %v1089_v38  ;;  %v1152_v52 = vld [vmem:[%s1662_s2 + $0x2d8] sm:$0xf0] }
 0x2e7   :  { %v580_v55 = vadd.f32 1.0, %v1181_v53  ;;  %v1069_v53 = vor.u32 %v1152_v52, %v1068_v51 }
 0x2e8   :  { %1182 = vpow2.f32 %v1031_v54  ;;  %v555_v0 = vpop.f32.mrf.mxu3  ;;  %v539_v54 = vpop.f32.mrf.mxu2 }
 0x2e9   :  { %1184 = vrcp.f32 %v580_v55  ;;  %v593_v5 = vand.u32 2147483648, %v580_v55  ;;  %v556_v6 = vadd.f32 %v555_v0, %v397_v61  ;;  %vm587_vm12 = vweird.f32 %v580_v55 }
 0x2ea   :  { %v591_v7 = vand.u32 2147483647, %v580_v55  ;;  %800 = vmatpush.bf16.msra.mxu3 %v1085_v41 }
 0x2eb   :  { %v594_v11 = vor.u32 1.1754944e-38, %v593_v5 }
 0x2ec   :  { %vm592_vm14 = vcmp.eq.f32.partialorder %v591_v7, 8.507059e+37  ;;  %v1166_v7 = vld [vmem:[%s1664_s3 + $0xc] ss:$0 sm:$0xff] }
 0x2ee   :  { %v1183_v57 = vpop.eup %1182  ;;  %801 = vmatpush.bf16.msra.mxu3 %v1081_v46 }
 0x2ef   :  { %v1185_v58 = vpop.eup %1184  ;;  %v581_v59 = vadd.f32 1.0, %v1183_v57  ;;  %v1164_v57 = vld [vmem:[%s1664_s3 + $0xa] ss:$0 sm:$0xff] }
 0x2f0   :  { %v583_v60 = vmul.f32 %v1185_v58, %v580_v55  ;;  %vm588_vm11 = vweird.f32 %v1185_v58  ;;  %v541_v55 = vpop.f32.mrf.mxu2 }
 0x2f1   :  { %1186 = vrcp.f32 %v581_v59  ;;  %vm589_vm13 = vmor %vm587_vm12, %vm588_vm11  ;;  %v608_v12 = vand.u32 2147483648, %v581_v59  ;;  %v606_v14 = vand.u32 2147483647, %v581_v59  ;;  %vm602_vm1 = vweird.f32 %v581_v59 }
 0x2f2   :  { %v584_v62 = vsub.f32 1.0, %v583_v60  ;;  %1188 = vtanh.f32 %v554_v2 }
 0x2f3   :  { %1190 = vtanh.f32 %v556_v6  ;;  %v609_v18 = vor.u32 1.1754944e-38, %v608_v12  ;;  %vm607_vm3 = vcmp.eq.f32.partialorder %v606_v14, 8.507059e+37 }
 0x2f4   :  { %v585_v63 = vmul.f32 %v1185_v58, %v584_v62 }
 0x2f6   :  { %v586_v3 = vadd.f32 %v1185_v58, %v585_v63 }
 0x2f7   :  { %v1187_v4 = vpop.eup %1186 }
 0x2f8   :  { %v598_v8 = vmul.f32 %v1187_v4, %v581_v59  ;;  %v590_v9 = vsel %vm589_vm13, %v1185_v58, %v586_v3  ;;  %vm603_vm15 = vweird.f32 %v1187_v4  ;;  %v1189_v17 = vpop.eup %1188  ;;  %v396_v58 = vperm.slane %v1558_v34, 0 }
 0x2f9   :  { %v595_v15 = vsel %vm592_vm14, %v594_v11, %v590_v9  ;;  %vm604_vm2 = vmor %vm602_vm1, %vm603_vm15  ;;  %v1191_v1 = vpop.eup %1190 }
 0x2fa   :  { %v599_v10 = vsub.f32 1.0, %v598_v8  ;;  %v612_v19 = vmul.f32 %v1189_v17, %v595_v15  ;;  %v540_v61 = vadd.f32 %v539_v54, %v396_v58  ;;  %v542_v62 = vadd.f32 %v541_v55, %v396_v58  ;;  %v1167_v15 = vld [vmem:[%s1664_s3 + $0xd] ss:$0 sm:$0xff] }
 0x2fc   :  { %v600_v13 = vmul.f32 %v1187_v4, %v599_v10  ;;  %v618_v25 = vadd.f32 %v1163_v22, %v612_v19 }
 0x2fe   :  { %v601_v16 = vadd.f32 %v1187_v4, %v600_v13 }
 0x300   :  { %v605_v20 = vsel %vm604_vm2, %v1187_v4, %v601_v16  ;;  %v1165_v4 = vld [vmem:[%s1664_s3 + $0xb] ss:$0 sm:$0xff] }
 0x301   :  { %v610_v23 = vsel %vm607_vm3, %v609_v18, %v605_v20 }
 0x302   :  { %v613_v24 = vmul.f32 %v1191_v1, %v610_v23 }
 0x304   :  { %v619_v26 = vadd.f32 %v1163_v22, %v613_v24 }
 0x306   :  { %v636_v27 = vpack.c.bf16 %v619_v26, %v618_v25 }
 0x308   :  { %693 = vmatmul.bf16.vlgmr.msra.gmra.mxu0 %v636_v27 }
 0x385   :  { %v694_v42 = vpop.f32.mrf.mxu0 }
 0x38d   :  { %v696_v43 = vpop.f32.mrf.mxu0 }
 0x38e   :  { %717 = vmatpush.msra.mxu2 %v696_v43 }
 0x390   :  { %718 = vmatpush.msra.mxu2 %v694_v42 }
 0x391   :  { %1064 = vmatmul.msk.f32.vlgmr.msra.gmra.mxu2 %vm327_vm10, %v1426_v21  ;;  %v1154_v21 = vld [vmem:[%s1662_s2 + $0x308] sm:$0xf0] }
 0x392   :  { %v1077_v48 = vor.u32 %v1154_v21, %v1076_v47 }
 0x394   :  { %802 = vmatpush.bf16.msra.mxu3 %v1077_v48 }
 0x399   :  { %1065 = vmatmul.msk.f32.gmra.mxu2 %vm327_vm10, %v1445_v28  ;;  %v1072_v28 = vld [vmem:[%s1662_s2 + $0x2e8] sm:$0xf] }
 0x39a   :  { %v1073_v50 = vor.u32 %v1153_v49, %v1072_v28 }
 0x39c   :  { %803 = vmatpush.bf16.msra.mxu3 %v1073_v50 }
 0x3a0   :  { %804 = vmatpush.bf16.msra.mxu3 %v1069_v53 }
 0x414   :  { %v720_v56 = vpop.f32.mrf.mxu2 }
 0x415   :  { %v721_v59 = vadd.f32 %v1164_v57, %v720_v56 }
 0x417   :  { %v726_v0 = vadd.f32 %v721_v59, %v540_v61 }
 0x41c   :  { %v723_v60 = vpop.f32.mrf.mxu2 }
 0x41d   :  { %v724_v63 = vadd.f32 %v1164_v57, %v723_v60 }
 0x41f   :  { %v727_v2 = vadd.f32 %v724_v63, %v542_v62 }
 0x421   :  { %v744_v3 = vpack.c.bf16 %v727_v2, %v726_v0 }
 0x423   :  { %805 = vmatmul.bf16.vlgmr.msra.gmra.mxu3 %v744_v3 }
 0x4a6   :  { %v806_v5 = vpop.f32.mrf.mxu3 }
 0x4a7   :  { %v807_v6 = vadd.f32 %v1165_v4, %v806_v5 }
 0x4a9   :  { %v811_v34 = vmax.f32 %v807_v6, 0.0 }
 0x4ab   :  { %v817_v8 = vmul.f32 %v1166_v7, %v811_v34 }
 0x4ad   :  { %v819_v9 = vsel %vm43_vm0, %v817_v8, 0.0 }
 0x4ae   :  { %v808_v10 = vpop.f32.mrf.mxu3  ;;  %820 = vadd.xlane.f32.xlu0 %v819_v9 }
 0x4af   :  { %v809_v11 = vadd.f32 %v1165_v4, %v808_v10 }
 0x4b1   :  { %v812_v12 = vmax.f32 %v809_v11, 0.0 }
 0x4b3   :  { %v818_v13 = vmul.f32 %v1166_v7, %v812_v12 }
 0x4b5   :  { %v822_v14 = vsel %vm43_vm0, %v818_v13, 0.0 }
 0x4b6   :  { %823 = vadd.xlane.f32.xlu0 %v822_v14 }
 0x521   :  { %v821_v16 = vpop.xlane.xlu0 %820 }
 0x522   :  { %v829_v17 = vadd.f32 %v1167_v15, %v821_v16 }
 0x524   :  { %832 = vst.msk [vmem:[%s1666_s4] sm:$0xff] %vm831_vm4, %v829_v17 }
 0x529   :  { %v824_v18 = vpop.xlane.xlu0 %823 }
 0x52a   :  { %v830_v19 = vadd.f32 %v1167_v15, %v824_v18 }
 0x52c   :  { %833 = vst.msk [vmem:[%s1666_s4 + $0x8] sm:$0xff] %vm831_vm4, %v830_v19 }

</bundles_post_ra>
